<compile_context>
chip_gen: v7x
topology: tpu7x:2x2x1
jax: 0.10.0
libtpu: 0.0.40
codegen_flags: <defaults>
</compile_context>

<pallas_src>
import functools

import numpy as np
import jax
import jax.numpy as jnp
from jax.experimental import pallas as pl
from jax.experimental.pallas import tpu as pltpu

# Cultural palettes (registered buffers in the PyTorch __init__), as constants.
CULTURAL_PALETTES = {
    "rajput": [[1.0, 0.0, 0.0], [1.0, 0.84, 0.0], [1.0, 1.0, 1.0], [0.0, 0.5, 0.0]],
    "pahari": [[0.53, 0.81, 0.92], [0.0, 0.5, 0.0], [1.0, 0.75, 0.8], [1.0, 1.0, 1.0]],
    "deccan": [[0.0, 0.0, 0.55], [0.5, 0.0, 0.5], [1.0, 0.84, 0.0], [1.0, 1.0, 1.0]],
    "mughal": [[1.0, 0.84, 0.0], [1.0, 0.0, 0.0], [0.0, 0.5, 0.0], [0.5, 0.0, 0.5]],
}
STYLE_TO_IDX = {name: i for i, name in enumerate(CULTURAL_PALETTES)}
NUM_STYLES = len(CULTURAL_PALETTES)       # 4
COLORS_PER_STYLE = 4

_PALETTE_NP = np.array(list(CULTURAL_PALETTES.values()), dtype=np.float32)  # (4,4,3)
PALETTE_STACK = jnp.asarray(_PALETTE_NP)                                    # (4,4,3)

_LANES = 128


def _cdiv(a, b):
    return -(-a // b)


def _round_up(a, m):
    return _cdiv(a, m) * m


def _per_buffer_vmem_budget():
    """Per-input-buffer VMEM budget (bytes); the pipeline double-buffers it."""
    try:
        kind = jax.devices()[0].device_kind.lower()
    except Exception:  # pragma: no cover - defensive; fall back to safe budget
        kind = ""
    if "v6" in kind:
        return 13 * 1024 * 1024   # 128 MiB VMEM, 32 MiB scoped default
    if "v7" in kind:
        return 12 * 1024 * 1024   # only 64 MiB/TC; stay well under 32 MiB scoped
    # v5e (16 MiB scoped default) and unknown chips: conservative but still big.
    return 6 * 1024 * 1024


def _pick_tiles(rows, hw, elem_bytes, budget):
    """Choose (row_tile, hw_tile) for the (rows, hw) channel-row layout."""
    full_row_bytes = hw * elem_bytes
    rows_fit = budget // max(full_row_bytes, 1)
    if rows_fit >= min(rows, 8):
        # The whole pixel axis fits in one chunk next to >= 8 rows.
        hw_tile = hw
        if rows_fit >= rows:
            row_tile = rows
            # Keep >= 2 "parallel" row tiles when there is enough work so both
            # TensorCores of a v7x chip (megacore sharding) stay busy.
            if rows >= 256:
                row_tile = _round_up(_cdiv(rows, 2), 8)
        else:
            row_tile = max(8, (rows_fit // 8) * 8)
        return row_tile, hw_tile
    # Very large images: chunk the pixel axis (lane-aligned chunks) and keep one
    # vreg worth of rows per block; partial sums accumulate across chunks.
    row_tile = min(rows, 8)
    hw_tile = budget // max(row_tile * elem_bytes, 1)
    hw_tile = max(512, (hw_tile // 512) * 512)
    if hw_tile >= hw:
        hw_tile = hw
    return row_tile, hw_tile


def _row_sum_kernel(pred_ref, out_ref, *, hw_total, hw_tile, ragged_hw):
    """Accumulate per-row (per sample-channel) pixel sums.

    pred_ref: (row_tile, hw_tile) input dtype -- rows on sublanes, pixels on lanes
    out_ref : (row_tile, 128) f32 -- row sums broadcast across a lane-dense slab;
              resident across the pixel-chunk grid axis (accumulator).
    """
    k = pl.program_id(1)

    @pl.when(k == 0)
    def _init():
        out_ref[...] = jnp.zeros_like(out_ref)

    x = pred_ref[...].astype(jnp.float32)          # widen in-kernel (bf16-safe)
    if ragged_hw:
        # Mask lanes past the true pixel count in the (possibly OOB) last chunk.
        lane = jax.lax.broadcasted_iota(jnp.int32, x.shape, dimension=1)
        x = jnp.where(k * hw_tile + lane < hw_total, x, 0.0)
    row_sum = jnp.sum(x, axis=-1, keepdims=True)   # (row_tile, 1) lane reduction
    out_ref[...] += row_sum                        # lane broadcast -> unmasked vst


def _channel_sums(pred_rows, hw):
    """Per-row pixel sums of a (rows, hw) array; returns f32 (rows, 128)."""
    rows = pred_rows.shape[0]
    elem_bytes = pred_rows.dtype.itemsize
    row_tile, hw_tile = _pick_tiles(rows, hw, elem_bytes, _per_buffer_vmem_budget())
    n_row_tiles = _cdiv(rows, row_tile)
    n_hw_chunks = _cdiv(hw, hw_tile)

    kernel = functools.partial(
        _row_sum_kernel,
        hw_total=hw,
        hw_tile=hw_tile,
        ragged_hw=(n_hw_chunks * hw_tile != hw),
    )
    return pl.pallas_call(
        kernel,
        out_shape=jax.ShapeDtypeStruct((rows, _LANES), jnp.float32),
        grid=(n_row_tiles, n_hw_chunks),
        in_specs=[pl.BlockSpec((row_tile, hw_tile), lambda i, k: (i, k))],
        out_specs=pl.BlockSpec((row_tile, _LANES), lambda i, k: (i, 0)),
        compiler_params=pltpu.CompilerParams(
            dimension_semantics=("parallel", "arbitrary")),
    )(pred_rows)


def cultural_loss(pred_nchw, styles):
    """Pallas implementation of CulturalLoss.forward(pred, {'styles': styles})."""
    b, c, h, w = pred_nchw.shape
    assert c == 3, "CulturalLoss operates on RGB images"
    hw = h * w
    # TODO(synk): torch.randperm subsampling (min(1000, H*W) pixels) is only exact
    # (full-pixel mean) when H*W <= 1000; larger images would need a sampled mean.

    # Free reshape of contiguous NCHW: channels fold into the sublane (row) axis.
    # No astype here: non-f32 inputs are widened per-block inside the kernel.
    pred_rows = pred_nchw.reshape(b * c, hw)

    sums = _channel_sums(pred_rows, hw)                        # (B*3, 128) f32
    mean_colors = sums[: b * c, 0].reshape(b, c) * (1.0 / hw)  # (B, 3)

    # Tiny palette math + style gather + masking + divide-by-B: XLA epilogue.
    style_idx = np.array([STYLE_TO_IDX.get(s, 0) for s in styles], dtype=np.int32)
    valid = np.array([1.0 if s in STYLE_TO_IDX else 0.0 for s in styles],
                     dtype=np.float32)

    pal = PALETTE_STACK[style_idx]                             # (B, 4, 3)
    diff = mean_colors[:, None, :] - pal                       # (B, 4, 3)
    dists = jnp.sqrt(jnp.sum(diff * diff, axis=-1))            # (B, 4)
    per_sample = jnp.min(dists, axis=-1)                       # (B,)
    return jnp.sum(per_sample * jnp.asarray(valid)) / b


def cultural_loss_ref(pred_nchw, styles):
    """Plain-JAX reference mirroring the PyTorch forward (H*W <= 1000)."""
    b, c, h, w = pred_nchw.shape
    pred = jnp.transpose(pred_nchw, (0, 2, 3, 1)).reshape(b, h * w, c)
    total = jnp.float32(0.0)
    for i, s in enumerate(styles):
        if s in STYLE_TO_IDX:
            mean_color = jnp.mean(pred[i], axis=0)                    # (3,)
            pal = PALETTE_STACK[STYLE_TO_IDX[s]]                      # (4, 3)
            d = jnp.sqrt(jnp.sum((pal - mean_color[None, :]) ** 2, axis=-1))
            total = total + jnp.min(d)
    return total / b


if __name__ == "__main__":
    key = jax.random.PRNGKey(0)
    B, C, H, W = 2, 3, 16, 16
    pred = jax.random.uniform(key, (B, C, H, W), dtype=jnp.float32)  # image in [0, 1]
    styles = ["rajput", "pahari"]

    loss = cultural_loss(pred, styles)
    loss = jax.block_until_ready(loss)

    ref = cultural_loss_ref(pred, styles)
    assert np.allclose(np.asarray(loss), np.asarray(ref), rtol=1e-5, atol=1e-5), (
        loss,
        ref,
    )
    print("KERNEL_OK")
</pallas_src>

<mosaic_0001>
module attributes {stable_mosaic.version = 11 : i64} {
  func.func @_row_sum_kernel(%arg0: i32, %arg1: i32, %arg2: memref<6x256xf32, #tpu.memory_space<vmem>>, %arg3: memref<6x128xf32, #tpu.memory_space<vmem>>) attributes {dimension_semantics = [#tpu.dimension_semantics<parallel>, #tpu.dimension_semantics<arbitrary>], iteration_bounds = array<i64: 1, 1>, scalar_prefetch = 0 : i64, scratch_operands = 0 : i64, tpu.core_type = #tpu.core_type<tc>, window_params = [{transform_indices = @transform_0, window_bounds = array<i64: 6, 256>}, {transform_indices = @transform_1, window_bounds = array<i64: 6, 128>}]} {
    %c0_i32 = arith.constant 0 : i32
    %0 = arith.cmpi eq, %arg1, %c0_i32 : i32
    %1 = arith.extui %0 : i1 to i32
    %c0_i32_0 = arith.constant 0 : i32
    %2 = arith.cmpi ne, %1, %c0_i32_0 : i32
    scf.if %2 {
      %cst_6 = arith.constant 0.000000e+00 : f32
      %10 = vector.broadcast %cst_6 : f32 to vector<6x128xf32>
      %c0_7 = arith.constant 0 : index
      %c0_8 = arith.constant 0 : index
      %11 = vector.load %arg3[%c0_7, %c0_8] : memref<6x128xf32, #tpu.memory_space<vmem>>, vector<6x128xf32>
      tpu.vector_store %arg3[%c0_7, %c0_8], %10 {strides = array<i32>} : memref<6x128xf32, #tpu.memory_space<vmem>>, vector<6x128xf32>,
    } else {
    }
    %c0 = arith.constant 0 : index
    %c0_1 = arith.constant 0 : index
    %3 = vector.load %arg2[%c0, %c0_1] : memref<6x256xf32, #tpu.memory_space<vmem>>, vector<6x256xf32>
    %cst = arith.constant dense<0.000000e+00> : vector<6xf32>
    %4 = vector.multi_reduction <add>, %3, %cst [1] : vector<6x256xf32> to vector<6xf32>
    %5 = vector.shape_cast %4 : vector<6xf32> to vector<6x1xf32>
    %c0_2 = arith.constant 0 : index
    %c0_3 = arith.constant 0 : index
    %6 = vector.load %arg3[%c0_2, %c0_3] : memref<6x128xf32, #tpu.memory_space<vmem>>, vector<6x128xf32>
    %7 = vector.broadcast %5 : vector<6x1xf32> to vector<6x128xf32>
    %8 = arith.addf %6, %7 : vector<6x128xf32>
    %c0_4 = arith.constant 0 : index
    %c0_5 = arith.constant 0 : index
    %9 = vector.load %arg3[%c0_4, %c0_5] : memref<6x128xf32, #tpu.memory_space<vmem>>, vector<6x128xf32>
    tpu.vector_store %arg3[%c0_4, %c0_5], %8 {strides = array<i32>} : memref<6x128xf32, #tpu.memory_space<vmem>>, vector<6x128xf32>,
    return
  }
  func.func @transform_0(%arg0: i32, %arg1: i32) -> (i32, i32) {
    %c0_i32 = arith.constant 0 : i32
    return %arg0, %arg1 : i32, i32
  }
  func.func @transform_1(%arg0: i32, %arg1: i32) -> (i32, i32) {
    %c0_i32 = arith.constant 0 : i32
    %c0_i32_0 = arith.constant 0 : i32
    return %arg0, %c0_i32 : i32, i32
  }
}

</mosaic_0001>

<bundles_post_ra>
// kernel: tpu_custom_call.1
= control target key start
LH: loop header
LB: loop body
LE: loop exit
PB: predicated region body
PF: predicated region fallthrough
CT: control target
= control target key end

     0   :  { %6 = vsyncpa [#allocation3], 0  ;;  %s140_s0 = inlined_call_operand.hbm [shape: f32[6,256], index: 0, kind: input, shape index: {}]   ;;  %s141_s1 = inlined_call_operand.hbm [shape: f32[6,128], index: 1, kind: output, shape index: {}]  }
   0x1   :  { %7 = vsyncpa [#allocation4], 0  ;;  %s103_s6 = smov [#allocation2]   ;;  %s55_s10 = scalar_lea.hbm %s140_s0, 256 }
   0x2   :  { %s14_s7 = sshll.u32 %s103_s6, 4  ;;  %p56_p0 = scmp.ne.s32.totalorder %s140_s0, %s55_s10  ;;  %s15_s7 = int_to_ptr.vmem [resolvable:$true] %s14_s7 }
   0x3   :  { %p59_p1 = scmp.lt.u32.totalorder %s55_s10, %s140_s0 }
   0x5   :  { %p61_p2 = pnand %p59_p1, %p56_p0 }
   0x7   :  { %64 = shalt.err (!%p61_p2)
}
   0x8   :  { %s65_s15 = scalar_lea.vmem %s15_s7, 256  ;;  %p70_p4 = scmp.lt.s32.totalorder %s15_s7, %s15_s7 }
   0x9   :  { %p66_p3 = scmp.ne.s32.totalorder %s15_s7, %s65_s15  ;;  %p71_p5 = scmp.lt.s32.totalorder %s65_s15, %s65_s15 }
   0xb   :  { %p72_p6 = por %p71_p5, %p70_p4 }
   0xd   :  { %p73_p7 = pnand %p72_p6, %p66_p3 }
   0xf   :  { %76 = shalt.err (!%p73_p7)
}
  0x10   :  { %17 = dma.hbm_to_vmem [thread:$0]  %s140_s0, 256, %s15_s7, [#allocation3]  }
  0x11   :  { %99 = dma.done.wait [#allocation3], 256  }
  0x12   :  { %100 = vsyncadd [#allocation3], 4294967040  ;;  %v104_v0 = vmov 0.0   ;;  %vm28_vm0 = vcmask 1045504   ;;  %v26_v1 = vld [vmem:[#allocation2] sm:$0x3f] }
  0x13   :  { %25 = vst [vmem:[#allocation5] sm:$0x3f] %v104_v0  ;;  %v27_v2 = vld [vmem:[#allocation2 + $0x8] sm:$0x3f]  ;;  %v29_v3 = vsel %vm28_vm0, %v26_v1, 0.0  ;;  %s105_s18 = smov [#allocation5]  }
  0x14   :  { %v30_v4 = vsel %vm28_vm0, %v27_v2, 0.0  ;;  %s43_s19 = sshll.u32 %s105_s18, 4  ;;  %s44_s19 = int_to_ptr.vmem [resolvable:$true] %s43_s19 }
  0x15   :  { %v31_v5 = vadd.f32 %v30_v4, %v29_v3  ;;  %s77_s20 = scalar_lea.vmem %s44_s19, 128  ;;  %p82_p9 = scmp.lt.s32.totalorder %s44_s19, %s44_s19 }
  0x16   :  { %p78_p8 = scmp.ne.s32.totalorder %s44_s19, %s77_s20  ;;  %p83_p10 = scmp.lt.s32.totalorder %s77_s20, %s77_s20 }
  0x17   :  { %32 = vadd.xlane.f32.xlu0 %v31_v5 }
  0x18   :  { %p84_p11 = por %p83_p10, %p82_p9 }
  0x1a   :  { %v34_v6 = vld [vmem:[#allocation5] sm:$0x3f]  ;;  %p85_p12 = pnand %p84_p11, %p78_p8 }
  0xa4   :  { %v33_v7 = vpop.xlane.xlu0 %32 }
  0xa5   :  { %v35_v8 = vadd.f32 %v34_v6, %v33_v7 }
  0xa7   :  { %36 = vst [vmem:[#allocation5] sm:$0x3f] %v35_v8 }
  0xa8   :  { %88 = shalt.err (!%p85_p12)
}
  0xa9   :  { %s89_s22 = scalar_lea.hbm %s141_s1, 128 }
  0xaa   :  { %p90_p13 = scmp.ne.s32.totalorder %s141_s1, %s89_s22  ;;  %p93_p0 = scmp.lt.u32.totalorder %s89_s22, %s141_s1 }
  0xac   :  { %p95_p1 = pnand %p93_p0, %p90_p13 }
  0xae   :  { %98 = shalt.err (!%p95_p1)
}
  0xaf   :  { %46 = dma.vmem_to_hbm [thread:$0]  %s44_s19, 128, %s141_s1, [#allocation4]  }
  0xb0   :  { %101 = dma.done.wait [#allocation4], 128  }
  0xb1   :  { %102 = vsyncadd [#allocation4], 4294967168 }
  0xb2   :  { %50 = vsyncpa [#allocation3], 1 }
  0xb3   :  { %51 = vsyncpa [#allocation4], 1 }

</bundles_post_ra>
